<compile_context>
chip_gen: v5e
topology: v5e:2x2
jax: 0.10.0
libtpu: 0.0.40
codegen_flags: <defaults>
</compile_context>

<pallas_src>
import jax
import jax.numpy as jnp
from jax import lax
from jax.experimental import pallas as pl
from jax.experimental.pallas import tpu as pltpu


def _round_up(x: int, m: int) -> int:
    return (x + m - 1) // m * m


def classifier_head_kernel(h_ref, e1_ref, e2_ref,
                           wc_ref, bc_ref, wcls_ref, bcls_ref,
                           out_ref):
    tb, s, _ = h_ref.shape          # static block sizes
    h = h_ref[...]                  # (TB, S, H)  bf16
    e1m = e1_ref[...]               # (TB, S)     f32 (0/1)
    e2m = e2_ref[...]               # (TB, S)     f32 (0/1)

    # One-hot mask selecting token 0, so cls/e1/e2 pooling share one MXU pass.
    col = lax.broadcasted_iota(jnp.int32, (tb, s), 1)
    clsm = (col == 0).astype(jnp.float32)

    mask3 = jnp.stack([clsm, e1m, e2m], axis=1)                       # (TB, 3, S)
    # Clamp denominator: avoids inf/NaN for all-zero entity masks (cls den is 1).
    den = jnp.maximum(jnp.sum(mask3, axis=-1, keepdims=True), 1.0)    # (TB, 3, 1)

    # Masked-sum pooling on the MXU: single read of h, bf16 x bf16 -> f32 acc.
    num = jnp.einsum('bks,bsh->bkh', mask3.astype(h.dtype), h,
                     preferred_element_type=jnp.float32)              # (TB, 3, H)

    pooled = num * pl.reciprocal(den, approx=True)                    # mean pool
    t = jnp.tanh(pooled)                                              # (TB, 3, H)

    # Fused connector: one (3*TB, H) @ (H, FCp) matmul instead of three.
    t_all = jnp.concatenate([t[:, 0, :], t[:, 1, :], t[:, 2, :]], axis=0)   # (3*TB, H)
    c_all = (jnp.dot(t_all, wc_ref[...], preferred_element_type=jnp.float32)
             + bc_ref[...])                                           # (3*TB, FCp)

    # Classifier: concat([c_cls, c_e1, c_e2], -1) @ Wcls as one lane-dense dot.
    combined = jnp.concatenate(
        [c_all[0:tb], c_all[tb:2 * tb], c_all[2 * tb:3 * tb]], axis=1)  # (TB, 3*FCp)
    out = (jnp.dot(combined, wcls_ref[...], preferred_element_type=jnp.float32)
           + bcls_ref[...])                                           # (TB, Cp)
    out_ref[...] = out.astype(out_ref.dtype)


def classifier_head(hidden_states, e1_mask, e2_mask, wc, bc, wcls, bcls, *, block_b=8):
    """Head of ClassifierModel.forward applied to the backbone's last_hidden_state."""
    B, S, H = hidden_states.shape
    FC = wc.shape[1]
    C = wcls.shape[1]
    assert wcls.shape[0] == 3 * FC

    # Lane-dense padding of the small feature dims (unmasked MXU cols / stores).
    FCp = _round_up(FC, 128)
    Cp = _round_up(C, 128)

    # Stream the big activation as bf16; masks stay f32 (exact 0/1 counts).
    h = hidden_states.astype(jnp.bfloat16)
    e1 = e1_mask.astype(jnp.float32)
    e2 = e2_mask.astype(jnp.float32)

    # Zero-padded weights (padded cols/rows contribute exactly zero).
    wc_p = jnp.zeros((H, FCp), jnp.float32).at[:, :FC].set(wc.astype(jnp.float32))
    bc_p = jnp.zeros((1, FCp), jnp.float32).at[:, :FC].set(
        jnp.reshape(bc, (1, FC)).astype(jnp.float32))
    wcls_p = jnp.zeros((3 * FCp, Cp), jnp.float32)
    for k in range(3):
        wcls_p = wcls_p.at[k * FCp:k * FCp + FC, :C].set(
            wcls[k * FC:(k + 1) * FC, :].astype(jnp.float32))
    bcls_p = jnp.zeros((1, Cp), jnp.float32).at[:, :C].set(
        jnp.reshape(bcls, (1, C)).astype(jnp.float32))

    # Batch tiling: TB rows per grid step (double-buffered DMA over h).
    TB = block_b
    B_pad = _round_up(B, TB)
    if B_pad != B:
        pad = B_pad - B
        h = jnp.pad(h, ((0, pad), (0, 0), (0, 0)))
        e1 = jnp.pad(e1, ((0, pad), (0, 0)))
        e2 = jnp.pad(e2, ((0, pad), (0, 0)))

    grid = (B_pad // TB,)

    cost = pl.CostEstimate(
        flops=2 * B_pad * (3 * S * H + 3 * H * FCp + 3 * FCp * Cp),
        transcendentals=B_pad * 3 * H,
        bytes_accessed=(h.size * 2 + e1.size * 4 + e2.size * 4
                        + (wc_p.size + bc_p.size + wcls_p.size + bcls_p.size) * 4
                        + B_pad * Cp * 4),
    )

    out_p = pl.pallas_call(
        classifier_head_kernel,
        out_shape=jax.ShapeDtypeStruct((B_pad, Cp), jnp.float32),
        grid=grid,
        in_specs=[
            pl.BlockSpec((TB, S, H), lambda i: (i, 0, 0)),      # hidden tile (streamed)
            pl.BlockSpec((TB, S), lambda i: (i, 0)),            # e1 mask tile
            pl.BlockSpec((TB, S), lambda i: (i, 0)),            # e2 mask tile
            pl.BlockSpec((H, FCp), lambda i: (0, 0)),           # wc   (VMEM-resident)
            pl.BlockSpec((1, FCp), lambda i: (0, 0)),           # bc   (VMEM-resident)
            pl.BlockSpec((3 * FCp, Cp), lambda i: (0, 0)),      # wcls (VMEM-resident)
            pl.BlockSpec((1, Cp), lambda i: (0, 0)),            # bcls (VMEM-resident)
        ],
        out_specs=pl.BlockSpec((TB, Cp), lambda i: (i, 0)),
        compiler_params=pltpu.CompilerParams(
            dimension_semantics=("parallel",),    # 2-TC sharding on v7x
            vmem_limit_bytes=32 * 1024 * 1024,    # lifts v5e's 16 MiB default; safe on all gens
        ),
        cost_estimate=cost,
    )(h, e1, e2, wc_p, bc_p, wcls_p, bcls_p)

    return out_p[:B, :C]


def reference_head(hidden_states, e1_mask, e2_mask, wc, bc, wcls, bcls):
    cls_out = hidden_states[:, 0, :]
    e1_out = (jnp.sum(hidden_states * e1_mask[:, :, None], axis=1)
              / jnp.sum(e1_mask, axis=1, keepdims=True))
    e2_out = (jnp.sum(hidden_states * e2_mask[:, :, None], axis=1)
              / jnp.sum(e2_mask, axis=1, keepdims=True))
    c_cls = jnp.tanh(cls_out) @ wc + bc
    c_e1 = jnp.tanh(e1_out) @ wc + bc
    c_e2 = jnp.tanh(e2_out) @ wc + bc
    combined = jnp.concatenate([c_cls, c_e1, c_e2], axis=-1)
    return combined @ wcls + bcls


if __name__ == "__main__":
    # Small shapes consistent with the module's forward (B chosen so the
    # batch grid has 2 steps with TB=8).
    B, S, H = 16, 16, 32        # batch, seq, hidden_size
    FC = 64                     # fc_size
    C = 42                      # class_num

    key = jax.random.PRNGKey(0)
    k_h, k_m1, k_m2, k_wc, k_bc, k_wcls, k_bcls = jax.random.split(key, 7)

    hidden_states = jax.random.normal(k_h, (B, S, H), dtype=jnp.float32)

    # Binary entity-token masks; guarantee at least one active token per row.
    e1_mask = (jax.random.uniform(k_m1, (B, S)) > 0.5).astype(jnp.float32)
    e2_mask = (jax.random.uniform(k_m2, (B, S)) > 0.5).astype(jnp.float32)
    e1_mask = e1_mask.at[:, 1].set(1.0)
    e2_mask = e2_mask.at[:, 2].set(1.0)

    # Deterministic parameter init (Linear weights stored as [in, out]).
    wc = jax.random.normal(k_wc, (H, FC), dtype=jnp.float32) * 0.05
    bc = jax.random.normal(k_bc, (1, FC), dtype=jnp.float32) * 0.05
    wcls = jax.random.normal(k_wcls, (3 * FC, C), dtype=jnp.float32) * 0.05
    bcls = jax.random.normal(k_bcls, (1, C), dtype=jnp.float32) * 0.05

    out = classifier_head(hidden_states, e1_mask, e2_mask, wc, bc, wcls, bcls)
    out = jax.block_until_ready(out)

    # Reference computed from the same bf16-quantized hidden states the kernel
    # streams (so only accumulation order / approx-reciprocal differ).
    h_bf = hidden_states.astype(jnp.bfloat16).astype(jnp.float32)
    ref = reference_head(h_bf, e1_mask, e2_mask, wc, bc, wcls, bcls)

    assert out.shape == (B, C)
    assert jnp.allclose(out, ref, atol=2e-2, rtol=2e-2), "mismatch vs reference"

    print("KERNEL_OK")
</pallas_src>

<mosaic_0001>
module attributes {stable_mosaic.version = 11 : i64} {
  func.func @classifier_head_kernel(%arg0: i32, %arg1: memref<8x16x32xbf16, #tpu.memory_space<vmem>>, %arg2: memref<8x16xf32, #tpu.memory_space<vmem>>, %arg3: memref<8x16xf32, #tpu.memory_space<vmem>>, %arg4: memref<32x128xf32, #tpu.memory_space<vmem>>, %arg5: memref<1x128xf32, #tpu.memory_space<vmem>>, %arg6: memref<384x128xf32, #tpu.memory_space<vmem>>, %arg7: memref<1x128xf32, #tpu.memory_space<vmem>>, %arg8: memref<8x128xf32, #tpu.memory_space<vmem>>) attributes {dimension_semantics = [#tpu.dimension_semantics<parallel>], iteration_bounds = array<i64: 2>, scalar_prefetch = 0 : i64, scratch_operands = 0 : i64, tpu.core_type = #tpu.core_type<tc>, window_params = [{transform_indices = @transform_0, window_bounds = array<i64: 8, 16, 32>}, {transform_indices = @transform_1, window_bounds = array<i64: 8, 16>}, {transform_indices = @transform_2, window_bounds = array<i64: 8, 16>}, {pipeline_mode = #tpu.pipeline_mode<synchronous>, transform_indices = @transform_3, window_bounds = array<i64: 32, 128>}, {pipeline_mode = #tpu.pipeline_mode<synchronous>, transform_indices = @transform_4, window_bounds = array<i64: 1, 128>}, {pipeline_mode = #tpu.pipeline_mode<synchronous>, transform_indices = @transform_5, window_bounds = array<i64: 384, 128>}, {pipeline_mode = #tpu.pipeline_mode<synchronous>, transform_indices = @transform_6, window_bounds = array<i64: 1, 128>}, {transform_indices = @transform_7, window_bounds = array<i64: 8, 128>}]} {
    %c0 = arith.constant 0 : index
    %c0_0 = arith.constant 0 : index
    %c0_1 = arith.constant 0 : index
    %0 = vector.load %arg1[%c0, %c0_0, %c0_1] : memref<8x16x32xbf16, #tpu.memory_space<vmem>>, vector<8x16x32xbf16>
    %c0_2 = arith.constant 0 : index
    %c0_3 = arith.constant 0 : index
    %1 = vector.load %arg2[%c0_2, %c0_3] : memref<8x16xf32, #tpu.memory_space<vmem>>, vector<8x16xf32>
    %c0_4 = arith.constant 0 : index
    %c0_5 = arith.constant 0 : index
    %2 = vector.load %arg3[%c0_4, %c0_5] : memref<8x16xf32, #tpu.memory_space<vmem>>, vector<8x16xf32>
    %3 = tpu.iota {dimensions = array<i32: 1>} : vector<8x16xi32>
    %c0_i32 = arith.constant 0 : i32
    %4 = vector.broadcast %c0_i32 : i32 to vector<8x16xi32>
    %5 = arith.cmpi eq, %3, %4 : vector<8x16xi32>
    %6 = arith.extui %5 : vector<8x16xi1> to vector<8x16xi32>
    %7 = arith.sitofp %6 : vector<8x16xi32> to vector<8x16xf32>
    %8 = vector.shape_cast %7 : vector<8x16xf32> to vector<8x1x16xf32>
    %9 = vector.shape_cast %1 : vector<8x16xf32> to vector<8x1x16xf32>
    %10 = vector.shape_cast %2 : vector<8x16xf32> to vector<8x1x16xf32>
    %11 = tpu.concatenate %8, %9, %10 in 1 : vector<8x1x16xf32>, vector<8x1x16xf32>, vector<8x1x16xf32> -> vector<8x3x16xf32>
    %cst = arith.constant dense<0.000000e+00> : vector<8x3xf32>
    %12 = vector.multi_reduction <add>, %11, %cst [2] : vector<8x3x16xf32> to vector<8x3xf32>
    %13 = vector.shape_cast %12 : vector<8x3xf32> to vector<8x3x1xf32>
    %cst_6 = arith.constant 1.000000e+00 : f32
    %14 = vector.broadcast %cst_6 : f32 to vector<8x3x1xf32>
    %15 = arith.maximumf %13, %14 : vector<8x3x1xf32>
    %16 = arith.truncf %11 : vector<8x3x16xf32> to vector<8x3x16xbf16>
    "tpu.trace_start"() <{level = 10 : i32, message = "bks,bsh->bkh"}> : () -> ()
    %cst_7 = arith.constant dense<0.000000e+00> : vector<8x3x32xf32>
    %17 = tpu.matmul %16, %0, %cst_7 {dimension_numbers = #tpu.dot_dimension_numbers<[2], [1], [1], [2], [0, 0, 0, 1, 1, 2], [0], [0]>} : vector<8x3x16xbf16>, vector<8x16x32xbf16>, vector<8x3x32xf32> -> vector<8x3x32xf32>
    "tpu.trace_stop"() : () -> ()
    %18 = tpu.reciprocal %15 {approx = true} : vector<8x3x1xf32> -> vector<8x3x1xf32>
    %19 = vector.broadcast %18 : vector<8x3x1xf32> to vector<8x3x32xf32>
    %20 = arith.mulf %17, %19 : vector<8x3x32xf32>
    %21 = math.tanh %20 : vector<8x3x32xf32>
    %22 = vector.extract_strided_slice %21 {offsets = [0, 0, 0], sizes = [8, 1, 32], strides = [1, 1, 1]} : vector<8x3x32xf32> to vector<8x1x32xf32>
    %23 = vector.shape_cast %22 : vector<8x1x32xf32> to vector<8x32xf32>
    %24 = vector.extract_strided_slice %21 {offsets = [0, 1, 0], sizes = [8, 1, 32], strides = [1, 1, 1]} : vector<8x3x32xf32> to vector<8x1x32xf32>
    %25 = vector.shape_cast %24 : vector<8x1x32xf32> to vector<8x32xf32>
    %26 = vector.extract_strided_slice %21 {offsets = [0, 2, 0], sizes = [8, 1, 32], strides = [1, 1, 1]} : vector<8x3x32xf32> to vector<8x1x32xf32>
    %27 = vector.shape_cast %26 : vector<8x1x32xf32> to vector<8x32xf32>
    %28 = tpu.concatenate %23, %25, %27 in 0 : vector<8x32xf32>, vector<8x32xf32>, vector<8x32xf32> -> vector<24x32xf32>
    %c0_8 = arith.constant 0 : index
    %c0_9 = arith.constant 0 : index
    %29 = vector.load %arg4[%c0_8, %c0_9] : memref<32x128xf32, #tpu.memory_space<vmem>>, vector<32x128xf32>
    %cst_10 = arith.constant dense<0.000000e+00> : vector<24x128xf32>
    %30 = tpu.matmul %28, %29, %cst_10 {dimension_numbers = #tpu.dot_dimension_numbers<[1], [0], [0], [1], [0, 0, 1, 1], [], []>} : vector<24x32xf32>, vector<32x128xf32>, vector<24x128xf32> -> vector<24x128xf32>
    %c0_11 = arith.constant 0 : index
    %c0_12 = arith.constant 0 : index
    %31 = vector.load %arg5[%c0_11, %c0_12] : memref<1x128xf32, #tpu.memory_space<vmem>>, vector<1x128xf32>
    %32 = vector.broadcast %31 : vector<1x128xf32> to vector<24x128xf32>
    %33 = arith.addf %30, %32 : vector<24x128xf32>
    %34 = vector.extract_strided_slice %33 {offsets = [0, 0], sizes = [8, 128], strides = [1, 1]} : vector<24x128xf32> to vector<8x128xf32>
    %35 = vector.extract_strided_slice %33 {offsets = [8, 0], sizes = [8, 128], strides = [1, 1]} : vector<24x128xf32> to vector<8x128xf32>
    %36 = vector.extract_strided_slice %33 {offsets = [16, 0], sizes = [8, 128], strides = [1, 1]} : vector<24x128xf32> to vector<8x128xf32>
    %37 = tpu.concatenate %34, %35, %36 in 1 : vector<8x128xf32>, vector<8x128xf32>, vector<8x128xf32> -> vector<8x384xf32>
    %c0_13 = arith.constant 0 : index
    %c0_14 = arith.constant 0 : index
    %38 = vector.load %arg6[%c0_13, %c0_14] : memref<384x128xf32, #tpu.memory_space<vmem>>, vector<384x128xf32>
    %cst_15 = arith.constant dense<0.000000e+00> : vector<8x128xf32>
    %39 = tpu.matmul %37, %38, %cst_15 {dimension_numbers = #tpu.dot_dimension_numbers<[1], [0], [0], [1], [0, 0, 1, 1], [], []>} : vector<8x384xf32>, vector<384x128xf32>, vector<8x128xf32> -> vector<8x128xf32>
    %c0_16 = arith.constant 0 : index
    %c0_17 = arith.constant 0 : index
    %40 = vector.load %arg7[%c0_16, %c0_17] : memref<1x128xf32, #tpu.memory_space<vmem>>, vector<1x128xf32>
    %41 = vector.broadcast %40 : vector<1x128xf32> to vector<8x128xf32>
    %42 = arith.addf %39, %41 : vector<8x128xf32>
    %c0_18 = arith.constant 0 : index
    %c0_19 = arith.constant 0 : index
    %43 = vector.load %arg8[%c0_18, %c0_19] : memref<8x128xf32, #tpu.memory_space<vmem>>, vector<8x128xf32>
    tpu.vector_store %arg8[%c0_18, %c0_19], %42 {strides = array<i32>} : memref<8x128xf32, #tpu.memory_space<vmem>>, vector<8x128xf32>,
    return
  }
  func.func @transform_0(%arg0: i32) -> (i32, i32, i32) {
    %c0_i32 = arith.constant 0 : i32
    %c0_i32_0 = arith.constant 0 : i32
    %c0_i32_1 = arith.constant 0 : i32
    return %arg0, %c0_i32, %c0_i32_0 : i32, i32, i32
  }
  func.func @transform_1(%arg0: i32) -> (i32, i32) {
    %c0_i32 = arith.constant 0 : i32
    %c0_i32_0 = arith.constant 0 : i32
    return %arg0, %c0_i32 : i32, i32
  }
  func.func @transform_2(%arg0: i32) -> (i32, i32) {
    %c0_i32 = arith.constant 0 : i32
    %c0_i32_0 = arith.constant 0 : i32
    return %arg0, %c0_i32 : i32, i32
  }
  func.func @transform_3(%arg0: i32) -> (i32, i32) {
    %c0_i32 = arith.constant 0 : i32
    %c0_i32_0 = arith.constant 0 : i32
    %c0_i32_1 = arith.constant 0 : i32
    return %c0_i32, %c0_i32_0 : i32, i32
  }
  func.func @transform_4(%arg0: i32) -> (i32, i32) {
    %c0_i32 = arith.constant 0 : i32
    %c0_i32_0 = arith.constant 0 : i32
    %c0_i32_1 = arith.constant 0 : i32
    return %c0_i32, %c0_i32_0 : i32, i32
  }
  func.func @transform_5(%arg0: i32) -> (i32, i32) {
    %c0_i32 = arith.constant 0 : i32
    %c0_i32_0 = arith.constant 0 : i32
    %c0_i32_1 = arith.constant 0 : i32
    return %c0_i32, %c0_i32_0 : i32, i32
  }
  func.func @transform_6(%arg0: i32) -> (i32, i32) {
    %c0_i32 = arith.constant 0 : i32
    %c0_i32_0 = arith.constant 0 : i32
    %c0_i32_1 = arith.constant 0 : i32
    return %c0_i32, %c0_i32_0 : i32, i32
  }
  func.func @transform_7(%arg0: i32) -> (i32, i32) {
    %c0_i32 = arith.constant 0 : i32
    %c0_i32_0 = arith.constant 0 : i32
    return %arg0, %c0_i32 : i32, i32
  }
}

</mosaic_0001>

<bundles_post_ra>
// kernel: tpu_custom_call.1
= control target key start
LH: loop header
LB: loop body
LE: loop exit
PB: predicated region body
PF: predicated region fallthrough
CT: control target
= control target key end

     0   :  { %s1932_s0 = inlined_call_operand.hbm [shape: bf16[16,16,32], index: 0, kind: input, shape index: {}]   ;;  %s1933_s1 = inlined_call_operand.hbm [shape: f32[16,16], index: 1, kind: input, shape index: {}]   ;;  %s1934_s2 = inlined_call_operand.hbm [shape: f32[16,16], index: 2, kind: input, shape index: {}]   ;;  %s1935_s3 = inlined_call_operand.hbm [shape: f32[32,128], index: 3, kind: input, shape index: {}]   ;;  %s1936_s4 = inlined_call_operand.vmem [shape: f32[1,128], index: 4, kind: input, shape index: {}]   ;;  %s1937_s5 = inlined_call_operand.hbm [shape: f32[384,128], index: 5, kind: input, shape index: {}]   ;;  %s1938_s6 = inlined_call_operand.vmem [shape: f32[1,128], index: 6, kind: input, shape index: {}]   ;;  %s1939_s7 = inlined_call_operand.hbm [shape: f32[16,128], index: 7, kind: output, shape index: {}]  }
   0x1   :  { %1951 = sst [smem:[#allocation22_spill]] %s1933_s1 }
   0x2   :  { %1952 = sst [smem:[#allocation23_spill]] %s1935_s3 }
   0x3   :  { %1953 = sst [smem:[#allocation24_spill]] %s1937_s5 }
   0x4   :  { %12 = vsyncpa [#allocation3], 0 }
   0x5   :  { %14 = vsyncpa [#allocation3 + $0x1], 0 }
   0x6   :  { %15 = vsyncpa [#allocation6], 0 }
   0x7   :  { %17 = vsyncpa [#allocation6 + $0x1], 0 }
   0x8   :  { %18 = vsyncpa [#allocation9], 0 }
   0x9   :  { %19 = vsyncpa [#allocation4], 0 }
   0xa   :  { %21 = vsyncpa [#allocation4 + $0x1], 0  ;;  %s1582_s24 = smov 0   ;;  %s1584_s25 = smov 0  }
   0xb   :  { %s1586_s26 = smov 0   ;;  %s1588_s27 = smov 0  }
   0xc LB: > { %1954 = sst [smem:[#allocation16_spill]] %s1521_s24  ;;  %s1606_s8 = sadd.s32 4294967295, %s1533_s27   ;;  %s1533_s27 = sphi %s1588_s27, %s1978_s27   ;;  %s1529_s26 = sphi %s1586_s26, %s1980_s26   ;;  %s1525_s25 = sphi %s1584_s25, %s1982_s25   ;;  %s1521_s24 = sphi %s1582_s24, %s1981_s24  }
   0xd   : > { %1955 = sst [smem:[#allocation17_spill]] %s1529_s26  ;;  %p1116_p0 = scmp.ge.s32.totalorder %s1533_s27, 1 }
   0xe   : > { %s1956_s3 = sld [smem:[#allocation23_spill]]  ;;  %p1944_p1 = scmp.eq.s32.totalorder %s1606_s8, 0 }
   0xf   : > { %p220_p2 = scmp.lt.s32.totalorder %s1533_s27, 3  ;;  %s1535_s10 = smov [#allocation8]  }
  0x10   : > { %s233_s11 = sshll.u32 %s1535_s10, 4  ;;  %s1940_s13 = smov 128   ;;  %s234_s11 = int_to_ptr.vmem [resolvable:$true] %s233_s11 }
  0x11   : > { %p1611_p3 = pnand %p1116_p0, %p220_p2  ;;  %s1941_s14 = smov 8  }
  0x12   : > { %s1115_s15 = sadd.s32 4294967294, %s1533_s27   ;;  %s1631_s16 = sadd.s32 1, %s1533_s27  }
  0x13   : > { %p1209_p4 = pneg %p1611_p3  ;;  %1959 = sst [smem:[#allocation18_spill]] %s1631_s16 }
  0x14   : > { %s231_s30 = sshll.u32 %s1956_s3, 4  ;;  %s34_s17 = sadd.s32 1, %s1529_s26  ;;  %s232_s30 = int_to_ptr.hbm [resolvable:$true] %s231_s30 }
  0x15   : > { %p1620_p6 = pnand %p1209_p4, %p1944_p1  ;;  %s31_s18 = ssub.s32 %s1533_s27, %s1631_s16 }
  0x16   : > { %p41_p7 = scmp.ne.s32.totalorder %s1529_s26, %s1525_s25  ;;  %p32_p8 = scmp.eq.s32.totalorder %s31_s18, 0 }
  0x17   : > { %1212 = dma.hbm_to_vmem [thread:$0]  (!%p1620_p6), %s232_s30, 512, %s234_s11, [#allocation9], %s1940_s13, %s1940_s13, %s1941_s14  }
  0x18   : > { %p42_p9 = scmp.eq.s32.totalorder %s1533_s27, 0  ;;  %p47_p10 = scmp.ne.s32.totalorder %s1525_s25, %s1521_s24 }
  0x19   : > { %p207_p11 = scmp.eq.s32.totalorder %s1606_s8, 1  ;;  %p213_p2 = scmp.eq.s32.totalorder %s1115_s15, 1 }
  0x1a   : > { %s1643_s19 = scalar_select %p32_p8, %s1529_s26, %s34_s17  }
  0x1b   : > { %p43_p12 = por %p42_p9, %p41_p7  ;;  %p1647_p13 = por %p1944_p1, %p47_p10 }
  0x1c   : > { %1960 = sst [smem:[#allocation19_spill]] %s1643_s19  ;;  %p1651_p0 = por %p207_p11, %p41_p7 }
  0x1d   : > { %p1232_p4 = scmp.lt.s32.totalorder %s1533_s27, 2  ;;  %s1657_s22 = sand.u32 1, %s1529_s26  }
  0x1e   : > { %s1962_s21 = scalar_select %p1651_p0, 1, 0 }
  0x1f   : > { %p1659_p5 = por %p213_p2, %p47_p10  ;;  %s290_s28 = sand.u32 1, %s1533_s27  }
  0x20   : > { %1963 = sst [smem:[#allocation20_spill]] %s1962_s21  ;;  %p1664_p8 = pnand %p1232_p4, %p43_p12 }
  0x21   : > { %s1964_s23 = scalar_select %p1659_p5, 1, 0 }
  0x22   : > { %s1943_s30 = sshll.u32 %s1657_s22, 3  ;;  %s1125_s10 = sshll.u32 %s1533_s27, 3 }
  0x23   : > { %1965 = sst [smem:[#allocation21_spill]] %s1964_s23  ;;  %s294_s18 = scalar_lea.vmem [#allocation5], %s1943_s30 }
  0x24   : > { %s1967_s1 = sld [smem:[#allocation22_spill]]  ;;  %s302_s13 = sshll.u32 %s294_s18, 4  ;;  %s303_s13 = int_to_ptr.vmem [resolvable:$true] %s302_s13 }
  0x25   : > { %s1675_s3 = scalar_lea.sflag [#allocation6], %s290_s28  ;;  %p1343_p9 = pneg %p1664_p8 }
  0x2a   : > { %s298_s17 = scalar_lea.hbm %s1967_s1, %s1125_s10  ;;  %s1346_s30 = scalar_lea.hbm %s1967_s1, 16 }
  0x2b   : > { %s300_s14 = sshll.u32 %s298_s17, 4  ;;  %s301_s14 = int_to_ptr.hbm [resolvable:$true] %s300_s14 }
  0x2c   : > { %s1339_s19 = sshra.s32 %s301_s14, 4  ;;  %s1340_s19 = int_to_ptr.hbm [resolvable:$true] %s1339_s19 }
  0x2d   : > { %s1341_s26 = scalar_lea.hbm %s1340_s19, 8  ;;  %p1347_p12 = scmp.lt.s32.totalorder %s1340_s19, %s1967_s1 }
  0x2e   : > { %p1342_p7 = scmp.ne.s32.totalorder %s1340_s19, %s1341_s26  ;;  %p1348_p2 = scmp.lt.s32.totalorder %s1346_s30, %s1341_s26 }
  0x30   : > { %p1344_p10 = pnand %p1343_p9, %p1342_p7  ;;  %p1349_p4 = por %p1348_p2, %p1347_p12 }
  0x32   : > { %p1345_p11 = pneg %p1344_p10 }
  0x34   : > { %p1350_p1 = pnand %p1349_p4, %p1345_p11 }
  0x36   : > { %1353 = shalt.err (!%p1350_p1)
}
  0x37   : > { %1222 = dma.hbm_to_vmem [thread:$0]  (!%p1664_p8), %s301_s14, 128, %s303_s13, %s1675_s3  }
  0x38   : > { %s1694_s11 = scalar_lea.hbm %s1934_s2, %s1125_s10  ;;  %s1968_s5 = sld [smem:[#allocation24_spill]] }
  0x39   : > { %s1538_s19 = smov [#allocation10]   ;;  %s1120_s18 = sshll.u32 %s1657_s22, 6 }
  0x3a   : > { %s250_s30 = sshll.u32 %s1538_s19, 4  ;;  %s1969_s17 = smov 8   ;;  %s251_s30 = int_to_ptr.vmem [resolvable:$true] %s250_s30 }
  0x3b   : > { %s1970_s13 = smov 128   ;;  %s1184_s14 = sshll.u32 %s1533_s27, 6 }
  0x3c   : > { %s277_s28 = scalar_lea.hbm %s1932_s0, %s1184_s14  ;;  %s271_s23 = scalar_lea.vmem [#allocation2], %s1120_s18 }
  0x3d   : > { %s280_s15 = sshll.u32 %s271_s23, 4  ;;  %s278_s1 = sshll.u32 %s277_s28, 4  ;;  %s281_s15 = int_to_ptr.vmem [resolvable:$true] %s280_s15  ;;  %s279_s1 = int_to_ptr.hbm [resolvable:$true] %s278_s1 }
  0x3e   : > { %s248_s26 = sshll.u32 %s1968_s5, 4  ;;  %s319_s5 = sshll.u32 %s1694_s11, 4  ;;  %s249_s26 = int_to_ptr.hbm [resolvable:$true] %s248_s26  ;;  %s320_s5 = int_to_ptr.hbm [resolvable:$true] %s319_s5 }
  0x3f   : > { %1215 = dma.hbm_to_vmem [thread:$0]  (!%p1620_p6), %s249_s26, 6144, %s251_s30, [#allocation9], %s1970_s13, %s1970_s13, %s1969_s17  }
  0x40   : > { %s268_s19 = scalar_lea.sflag [#allocation3], %s1657_s22  ;;  %s1399_s24 = sshra.s32 %s279_s1, 4  ;;  %s1400_s24 = int_to_ptr.hbm [resolvable:$true] %s1399_s24 }
  0x41   : > { %s1401_s21 = scalar_lea.hbm %s1400_s24, 64  ;;  %s1406_s30 = scalar_lea.hbm %s1932_s0, 128 }
  0x42   : > { %p1402_p1 = scmp.ne.s32.totalorder %s1400_s24, %s1401_s21  ;;  %p1407_p10 = scmp.lt.s32.totalorder %s1400_s24, %s1932_s0 }
  0x43   : > { %p1408_p11 = scmp.lt.s32.totalorder %s1406_s30, %s1401_s21 }
  0x44   : > { %p1404_p7 = pnand %p1402_p1, %p1343_p9 }
  0x45   : > { %p1409_p12 = por %p1408_p11, %p1407_p10 }
  0x46   : > { %p1405_p6 = pneg %p1404_p7 }
  0x48   : > { %p1410_p2 = pnand %p1409_p12, %p1405_p6 }
  0x4a   : > { %1413 = shalt.err (!%p1410_p2)
}
  0x4b   : > { %s1539_s11 = smov 64   ;;  %s1540_s13 = smov 4  }
  0x4c   : > { %1219 = dma.hbm_to_vmem [thread:$0]  (!%p1664_p8), %s279_s1, 1024, %s281_s15, %s268_s19, %s1539_s11, %s1539_s11, %s1540_s13  }
  0x4d   : > { %s1971_s14 = sshll.u32 %s1657_s22, 3  ;;  %s1429_s28 = sshra.s32 %s320_s5, 4  ;;  %s1430_s28 = int_to_ptr.hbm [resolvable:$true] %s1429_s28 }
  0x4e   : > { %s313_s16 = scalar_lea.vmem [#allocation7], %s1971_s14  ;;  %s1431_s23 = scalar_lea.hbm %s1430_s28, 8 }
  0x4f   : > { %s321_s10 = sshll.u32 %s313_s16, 4  ;;  %p1432_p4 = scmp.ne.s32.totalorder %s1430_s28, %s1431_s23  ;;  %s322_s10 = int_to_ptr.vmem [resolvable:$true] %s321_s10 }
  0x50   : > { %s1436_s12 = scalar_lea.hbm %s1934_s2, 16  ;;  %p1437_p6 = scmp.lt.s32.totalorder %s1430_s28, %s1934_s2 }
  0x51   : > { %p1434_p1 = pnand %p1432_p4, %p1343_p9  ;;  %p1438_p10 = scmp.lt.s32.totalorder %s1436_s12, %s1431_s23 }
  0x53   : > { %p1435_p7 = pneg %p1434_p1  ;;  %p1439_p11 = por %p1438_p10, %p1437_p6 }
  0x55   : > { %p1440_p12 = pnand %p1439_p11, %p1435_p7 }
  0x57   : > { %1443 = shalt.err (!%p1440_p12)
}
  0x58   : > { %1225 = dma.hbm_to_vmem [thread:$0]  (!%p1664_p8), %s320_s5, 128, %s322_s10, %s1675_s3  }
  0x59   : > { %330 = sbr.rel (%p1611_p3) target bundleno = 556 (0x22c), region = 48  ;;  %s1739_s1 = sand.u32 (!%p1611_p3), 1, %s1525_s25  }
  0x5a   : > { %s1129_s22 = sshll.u32 (!%p1611_p3), %s1739_s1, 6  ;;  %s333_s15 = scalar_lea.sflag (!%p1611_p3), [#allocation3], %s1739_s1 }
  0x5b   : > { %s1743_s19 = scalar_lea.vmem (!%p1611_p3), [#allocation2], %s1129_s22 }
  0x5e   : > { %1504 = dma.done.wait (%p1647_p13), %s333_s15, 1024  }
  0x5f   : > { %1506 = vsyncadd (%p1647_p13), %s333_s15, 4294966272  ;;  %s342_s3 = sand.u32 1, %s1606_s8   ;;  %s1751_s5 = sshll.u32 %s1739_s1, 3 }
  0x60   : > { %s343_s9 = scalar_lea.sflag [#allocation6], %s342_s3  ;;  %s346_s29 = scalar_lea.vmem [#allocation5], %s1751_s5 }
  0x61   : > { %1508 = dma.done.wait (%p1647_p13), %s343_s9, 256  }
  0x62   : > { %1510 = vsyncadd (%p1647_p13), %s343_s9, 4294967040  ;;  %s356_s17 = scalar_lea.vmem [#allocation7], %s1751_s5  ;;  %p1972_p3 = scmp.eq.s32.totalorder %s1606_s8, 0 }
  0x64   : > { %1512 = dma.done.wait (%p1972_p3), [#allocation9], 6656   ;;  %p1973_p8 = pmov %p1972_p3 }
  0x65   : > { %v428_v0 = vlaneseq  ;;  %v1541_v2 = vmov 0.0   ;;  %vm496_vm1 = vcmask 1040384   ;;  %vm505_vm2 = vcmask 1041408   ;;  %v1185_v4 = vld [vmem:[%s1743_s19] sm:$0xff]  ;;  %v1186_v5 = vld [vmem:[%s1743_s19 + $0x8] sm:$0xff]  ;;  %v1187_v6 = vld [vmem:[%s1743_s19 + $0x10] sm:$0xff] }
  0x66   : > { %1514 = vsyncadd (%p1973_p8), [#allocation9], 4294960640  ;;  %vm561_vm3 = vcmask 130048   ;;  %vm514_vm4 = vcmask 124928   ;;  %v1188_v8 = vld [vmem:[%s1743_s19 + $0x18] sm:$0xff]  ;;  %v1770_v9 = vld [vmem:[%s346_s29] sm:$0xff]  ;;  %572 = vmatpush.bf16.msra.mxu0 %v1185_v4  ;;  %594 = vmatpush.bf16.msra.mxu1 %v1186_v5 }
  0x67   : > { %v429_v1 = vand.u32 127, %v428_v0  ;;  %v1772_v10 = vld [vmem:[%s356_s17] sm:$0xff]  ;;  %v464_v14 = vperm.slane %v1770_v9, 0  ;;  %v449_v16 = vrot.slane %v1770_v9, 1  ;;  %616 = vmatpush.bf16.msra.mxu2 %v1187_v6  ;;  %638 = vmatpush.bf16.msra.mxu3 %v1188_v8  ;;  %v450_v20 = vrot.slane %v1770_v9, 2  ;;  %v1189_v24 = vld [vmem:[%s1743_s19 + $0x20] sm:$0xff] }
  0x68   : > { %v480_v15 = vperm.slane %v1772_v10, 0  ;;  %v457_v17 = vrot.slane %v1772_v10, 1  ;;  %v1191_v18 = vld [vmem:[%s1743_s19 + $0x30] sm:$0xff]  ;;  %v1192_v19 = vld [vmem:[%s1743_s19 + $0x38] sm:$0xff]  ;;  %v458_v21 = vrot.slane %v1772_v10, 2  ;;  %v451_v22 = vrot.slane %v1770_v9, 3 }
  0x69   : > { %vm430_vm0 = vcmp.eq.s32.totalorder %v429_v1, 0  ;;  %v459_v23 = vrot.slane %v1772_v10, 3  ;;  %v1190_v25 = vld [vmem:[%s1743_s19 + $0x28] sm:$0xff]  ;;  %v465_v27 = vperm.slane %v449_v16, 0  ;;  %v452_v29 = vrot.slane %v1770_v9, 4  ;;  %s1180_s11 = sshll.u32 %s1606_s8, 3 }
  0x6a   : > { %v1763_v3 = vsel %vm430_vm0, 1.0, %v1541_v2  ;;  %v481_v28 = vperm.slane %v457_v17, 0  ;;  %v466_v31 = vperm.slane %v450_v20, 0  ;;  %v482_v32 = vperm.slane %v458_v21, 0  ;;  %660 = vmatpush.bf16.msrb.mxu0 %v1189_v24  ;;  %682 = vmatpush.bf16.msrb.mxu1 %v1190_v25  ;;  %v816_v21 = vld [vmem:[#allocation8 + $0x18] sm:$0xff]  ;;  %v815_v24 = vld [vmem:[#allocation8 + $0x10] sm:$0xff]  ;;  %s978_s28 = scalar_lea.hbm %s1939_s7, %s1180_s11 }
  0x6b   : > { %v434_v7 = vrot.slane %v1763_v3, 1  ;;  %v435_v11 = vrot.slane %v1763_v3, 2  ;;  %v436_v12 = vrot.slane %v1763_v3, 3  ;;  %v437_v13 = vrot.slane %v1763_v3, 4  ;;  %704 = vmatpush.bf16.msrb.mxu2 %v1191_v18  ;;  %726 = vmatpush.bf16.msrb.mxu3 %v1192_v19  ;;  %v814_v25 = vld [vmem:[#allocation8 + $0x8] sm:$0xff]  ;;  %s407_s24 = scalar_lea.vmem [#allocation11], %s1751_s5 }
  0x6c   : > { %v497_v26 = vsel %vm496_vm1, %v1763_v3, %v464_v14  ;;  %v467_v33 = vperm.slane %v451_v22, 0  ;;  %v483_v37 = vperm.slane %v459_v23, 0  ;;  %v460_v41 = vrot.slane %v1772_v10, 4  ;;  %s980_s21 = sshll.u32 %s407_s24, 4  ;;  %s982_s12 = sshll.u32 %s978_s28, 4  ;;  %s981_s21 = int_to_ptr.vmem [resolvable:$true] %s980_s21  ;;  %s983_s12 = int_to_ptr.hbm [resolvable:$true] %s982_s12 }
  0x6d   : > { %v506_v30 = vsel %vm505_vm2, %v497_v26, %v480_v15  ;;  %v498_v36 = vsel %vm496_vm1, %v434_v7, %v465_v27  ;;  %v499_v39 = vsel %vm496_vm1, %v435_v11, %v466_v31  ;;  %v438_v48 = vrot.slane %v1763_v3, 5  ;;  %v813_v31 = vld [vmem:[#allocation8] sm:$0xff]  ;;  %s968_s8 = scalar_lea.sflag [#allocation4], %s1739_s1  ;;  %s1473_s26 = sshra.s32 %s983_s12, 4  ;;  %s1474_s26 = int_to_ptr.hbm [resolvable:$true] %s1473_s26 }
  0x6e   : > { %v547_v34 = vpack.c.bf16 %v506_v30, %v506_v30  ;;  %v515_v35 = vsel %vm514_vm4, %v506_v30, 0.0  ;;  %v507_v38 = vsel %vm505_vm2, %v498_v36, %v481_v28  ;;  %v500_v40 = vsel %vm496_vm1, %v436_v12, %v467_v33  ;;  %s1475_s30 = scalar_lea.hbm %s1474_s26, 8  ;;  %s1479_s19 = scalar_lea.hbm %s1939_s7, 16 }
  0x6f   : > { %516 = vadd.xlane.f32.xlu1 %v515_v35  ;;  %v518_v42 = vsel %vm514_vm4, %v507_v38, 0.0  ;;  %v548_v43 = vpack.c.bf16 %v507_v38, %v507_v38  ;;  %v508_v44 = vsel %vm505_vm2, %v499_v39, %v482_v32  ;;  %v509_v45 = vsel %vm505_vm2, %v500_v40, %v483_v37  ;;  %p1476_p13 = scmp.ne.s32.totalorder %s1474_s26, %s1475_s30  ;;  %p1480_p4 = scmp.lt.s32.totalorder %s1474_s26, %s1939_s7 }
  0x70   : > { %1140 = vmatmul.msk.bf16.vlgmr.msra.gmra.mxu0 %vm561_vm3, %v547_v34  ;;  %519 = vadd.xlane.f32.xlu0 %v518_v42  ;;  %v549_v46 = vpack.c.bf16 %v508_v44, %v508_v44  ;;  %v550_v47 = vpack.c.bf16 %v509_v45, %v509_v45  ;;  %v468_v49 = vperm.slane %v452_v29, 0  ;;  %v484_v50 = vperm.slane %v460_v41, 0  ;;  %p1481_p1 = scmp.lt.s32.totalorder %s1479_s19, %s1475_s30 }
  0x71   : > { %1145 = vmatmul.msk.bf16.vlgmr.msra.gmra.mxu1 %vm561_vm3, %v548_v43  ;;  %v453_v51 = vrot.slane %v1770_v9, 5  ;;  %v440_v52 = vrot.slane %v1763_v3, 7  ;;  %v461_v53 = vrot.slane %v1772_v10, 5  ;;  %v454_v54 = vrot.slane %v1770_v9, 6  ;;  %840 = vmatpush.msra.mxu0 %v816_v21  ;;  %p1477_p9 = pnand %p1476_p13, %p1651_p0 }
  0x72   : > { %1150 = vmatmul.msk.bf16.vlgmr.msra.gmra.mxu2 %vm561_vm3, %v549_v46  ;;  %1155 = vmatmul.msk.bf16.vlgmr.msra.gmra.mxu3 %vm561_vm3, %v550_v47  ;;  %v455_v55 = vrot.slane %v1770_v9, 7  ;;  %v463_v56 = vrot.slane %v1772_v10, 7  ;;  %v524_v57 = vsel %vm514_vm4, %v509_v45, 0.0  ;;  %v501_v58 = vsel %vm496_vm1, %v437_v13, %v468_v49  ;;  %p1482_p7 = por %p1481_p1, %p1480_p4 }
  0x73   : > { %v469_v59 = vperm.slane %v453_v51, 0  ;;  %v462_v60 = vrot.slane %v1772_v10, 6  ;;  %v510_v61 = vsel %vm505_vm2, %v501_v58, %v484_v50  ;;  %v439_v62 = vrot.slane %v1763_v3, 6  ;;  %841 = vmatpush.msra.mxu0 %v815_v24  ;;  %p1478_p2 = pneg %p1477_p9 }
  0x74   : > { %v470_v63 = vperm.slane %v454_v54, 0  ;;  %v471_v0 = vperm.slane %v455_v55, 0  ;;  %v521_v1 = vsel %vm514_vm4, %v508_v44, 0.0  ;;  %v527_v2 = vsel %vm514_vm4, %v510_v61, 0.0 }
  0x75   : > { %528 = vadd.xlane.f32.xlu2 %v527_v2  ;;  %v485_v4 = vperm.slane %v461_v53, 0  ;;  %v487_v5 = vperm.slane %v463_v56, 0  ;;  %v502_v6 = vsel %vm496_vm1, %v438_v48, %v469_v59  ;;  %v486_v7 = vperm.slane %v462_v60, 0  ;;  %842 = vmatpush.msra.mxu0 %v814_v25  ;;  %v868_v2 = vld [vmem:[#allocation10 + $0x70] sm:$0xff]  ;;  %p1483_p6 = pnand %p1482_p7, %p1478_p2 }
  0x76   : > { %v504_v8 = vsel %vm496_vm1, %v440_v52, %v471_v0  ;;  %v503_v9 = vsel %vm496_vm1, %v439_v62, %v470_v63  ;;  %v551_v11 = vpack.c.bf16 %v510_v61, %v510_v61  ;;  %vm765_vm5 = vcmask 1041409  }
  0x77   : > { %525 = vadd.xlane.f32.xlu1 %v524_v57  ;;  %v511_v3 = vsel %vm505_vm2, %v502_v6, %v485_v4  ;;  %v513_v10 = vsel %vm505_vm2, %v504_v8, %v487_v5  ;;  %v512_v12 = vsel %vm505_vm2, %v503_v9, %v486_v7  ;;  %843 = vmatpush.msra.mxu0 %v813_v31  ;;  %v885_v7 = vld [vmem:[#allocation10 + $0xf8] sm:$0xff]  ;;  %vm768_vm6 = vcmask 1042434  }
  0x78   : > { %522 = vadd.xlane.f32.xlu0 %v521_v1  ;;  %v530_v13 = vsel %vm514_vm4, %v511_v3, 0.0  ;;  %v536_v14 = vsel %vm514_vm4, %v513_v10, 0.0  ;;  %v552_v15 = vpack.c.bf16 %v511_v3, %v511_v3  ;;  %v533_v16 = vsel %vm514_vm4, %v512_v12, 0.0  ;;  %v869_v1 = vld [vmem:[#allocation10 + $0x78] sm:$0xff]  ;;  %926 = vmatpush.msra.mxu2 %v885_v7 }
  0x79   : > { %v553_v17 = vpack.c.bf16 %v512_v12, %v512_v12  ;;  %v554_v18 = vpack.c.bf16 %v513_v10, %v513_v10  ;;  %906 = vmatpush.msra.mxu1 %v869_v1  ;;  %v884_v12 = vld [vmem:[#allocation10 + $0xf0] sm:$0xff]  ;;  %vm771_vm7 = vcmask 1043459   ;;  %vm774_vm8 = vcmask 1044484  }
  0x7a   : > { %927 = vmatpush.msra.mxu2 %v884_v12  ;;  %vm777_vm9 = vcmask 1045509   ;;  %vm780_vm10 = vcmask 1046534   ;;  %vm783_vm11 = vcmask 1047559   ;;  %vm821_vm12 = vcmask 261120  }
  0x7b   : > { %907 = vmatpush.msra.mxu1 %v868_v2  ;;  %v860_v2 = vld [vmem:[#allocation10 + $0x30] sm:$0xff] }
  0x7d   : > { %531 = vadd.xlane.f32.xlu2 %v530_v13 }
  0x7f   : > { %537 = vadd.xlane.f32.xlu1 %v536_v14 }
  0x80   : > { %1160 = vmatmul.msk.bf16.vlgmr.msrb.gmra.mxu0 %vm561_vm3, %v551_v11  ;;  %534 = vadd.xlane.f32.xlu0 %v533_v16  ;;  %v867_v11 = vld [vmem:[#allocation10 + $0x68] sm:$0xff] }
  0x81   : > { %1165 = vmatmul.msk.bf16.vlgmr.msrb.gmra.mxu1 %vm561_vm3, %v552_v15 }
  0x82   : > { %1170 = vmatmul.msk.bf16.vlgmr.msrb.gmra.mxu2 %vm561_vm3, %v553_v17  ;;  %1175 = vmatmul.msk.bf16.vlgmr.msrb.gmra.mxu3 %vm561_vm3, %v554_v18  ;;  %v883_v17 = vld [vmem:[#allocation10 + $0xe8] sm:$0xff]  ;;  %v866_v18 = vld [vmem:[#allocation10 + $0x60] sm:$0xff] }
  0x83   : > { %908 = vmatpush.msra.mxu1 %v867_v11  ;;  %928 = vmatpush.msra.mxu2 %v883_v17 }
  0x85   : > { %909 = vmatpush.msra.mxu1 %v866_v18 }
  0xe2   : > { %v517_v19 = vpop.xlane.xlu1 %516 }
  0xe3   : > { %v520_v20 = vpop.xlane.xlu0 %519  ;;  %v539_v30 = vmax.f32 %v517_v19, 1.0  ;;  %v901_v19 = vld [vmem:[#allocation10 + $0x178] sm:$0xff] }
  0xe4   : > { %v540_v22 = vmax.f32 %v520_v20, 1.0  ;;  %946 = vmatpush.msra.mxu3 %v901_v19 }
  0xe6   : > { %1277 = vrcp.f32 %v540_v22  ;;  %v882_v22 = vld [vmem:[#allocation10 + $0xe0] sm:$0xff] }
  0xe7   : > { %929 = vmatpush.msra.mxu2 %v882_v22 }
  0xe8   : > { %v529_v23 = vpop.xlane.xlu2 %528 }
  0xe9   : > { %v543_v34 = vmax.f32 %v529_v23, 1.0  ;;  %v900_v23 = vld [vmem:[#allocation10 + $0x170] sm:$0xff] }
  0xea   : > { %v526_v26 = vpop.xlane.xlu1 %525  ;;  %947 = vmatpush.msra.mxu3 %v900_v23  ;;  %v855_v23 = vld [vmem:[#allocation10 + $0x8] sm:$0xff] }
  0xeb   : > { %v523_v27 = vpop.xlane.xlu0 %522  ;;  %v542_v32 = vmax.f32 %v526_v26, 1.0 }
  0xec   : > { %v541_v28 = vmax.f32 %v523_v27, 1.0  ;;  %v1278_v37 = vpop.eup %1277  ;;  %v865_v27 = vld [vmem:[#allocation10 + $0x58] sm:$0xff] }
  0xed   : > { %v574_v29 = vpop.f32.mrf.mxu0  ;;  %910 = vmatpush.msra.mxu1 %v865_v27  ;;  %v874_v27 = vld [vmem:[#allocation10 + $0xa0] sm:$0xff] }
  0xee   : > { %v596_v33 = vpop.f32.mrf.mxu1  ;;  %1279 = vrcp.f32 %v541_v28  ;;  %v899_v28 = vld [vmem:[#allocation10 + $0x168] sm:$0xff] }
  0xef   : > { %1281 = vrcp.f32 %v539_v30  ;;  %v741_v43 = vmul.f32 %v1278_v37, %v596_v33  ;;  %v881_v30 = vld [vmem:[#allocation10 + $0xd8] sm:$0xff]  ;;  %v898_v33 = vld [vmem:[#allocation10 + $0x160] sm:$0xff]  ;;  %948 = vmatpush.msra.mxu3 %v899_v28 }
  0xf0   : > { %v532_v35 = vpop.xlane.xlu2 %531  ;;  %1283 = vrcp.f32 %v542_v32  ;;  %v864_v32 = vld [vmem:[#allocation10 + $0x50] sm:$0xff]  ;;  %930 = vmatpush.msra.mxu2 %v881_v30  ;;  %v894_v28 = vld [vmem:[#allocation10 + $0x140] sm:$0xff]  ;;  %v893_v30 = vld [vmem:[#allocation10 + $0x138] sm:$0xff] }
  0xf1   : > { %v544_v36 = vmax.f32 %v532_v35, 1.0  ;;  %1285 = vrcp.f32 %v543_v34  ;;  %911 = vmatpush.msra.mxu1 %v864_v32  ;;  %949 = vmatpush.msra.mxu3 %v898_v33  ;;  %v892_v32 = vld [vmem:[#allocation10 + $0x130] sm:$0xff]  ;;  %v871_v33 = vld [vmem:[#allocation10 + $0x88] sm:$0xff] }
  0xf2   : > { %v538_v39 = vpop.xlane.xlu1 %537 }
  0xf3   : > { %1287 = vrcp.f32 %v544_v36  ;;  %v535_v45 = vpop.xlane.xlu0 %534  ;;  %v546_v47 = vmax.f32 %v538_v39, 1.0  ;;  %v880_v36 = vld [vmem:[#allocation10 + $0xd0] sm:$0xff] }
  0xf4   : > { %v1280_v40 = vpop.eup %1279  ;;  %v545_v50 = vmax.f32 %v535_v45, 1.0  ;;  %1289 = vtanh.f32 %v741_v43  ;;  %v879_v45 = vld [vmem:[#allocation10 + $0xc8] sm:$0xff]  ;;  %931 = vmatpush.msra.mxu2 %v880_v36  ;;  %v890_v36 = vld [vmem:[#allocation10 + $0x120] sm:$0xff] }
  0xf5   : > { %v576_v38 = vpop.f32.mrf.mxu0  ;;  %v618_v41 = vpop.f32.mrf.mxu2  ;;  %1291 = vrcp.f32 %v546_v47 }
  0xf6   : > { %v640_v42 = vpop.f32.mrf.mxu3  ;;  %v598_v44 = vpop.f32.mrf.mxu1  ;;  %v742_v49 = vmul.f32 %v1280_v40, %v618_v41  ;;  %v863_v40 = vld [vmem:[#allocation10 + $0x48] sm:$0xff]  ;;  %v897_v41 = vld [vmem:[#allocation10 + $0x158] sm:$0xff]  ;;  %932 = vmatpush.msra.mxu2 %v879_v45 }
  0xf7   : > { %v1282_v46 = vpop.eup %1281  ;;  %912 = vmatpush.msra.mxu1 %v863_v40  ;;  %950 = vmatpush.msra.mxu3 %v897_v41  ;;  %v886_v40 = vld [vmem:[#allocation10 + $0x100] sm:$0xff] }
  0xf8   : > { %v1284_v48 = vpop.eup %1283  ;;  %v740_v52 = vmul.f32 %v1282_v46, %v574_v29  ;;  %1293 = vtanh.f32 %v742_v49  ;;  %v1275_v41 = vld [vmem:[%s1936_s4] ss:$0 sm:$0xff] }
  0xf9   : > { %v1286_v51 = vpop.eup %1285  ;;  %v743_v53 = vmul.f32 %v1284_v48, %v640_v42  ;;  %1295 = vrcp.f32 %v545_v50  ;;  %v862_v50 = vld [vmem:[#allocation10 + $0x40] sm:$0xff] }
  0xfa   : > { %v1288_v54 = vpop.eup %1287  ;;  %1297 = vtanh.f32 %v740_v52  ;;  %913 = vmatpush.msra.mxu1 %v862_v50 }
  0xfb   : > { %1299 = vtanh.f32 %v743_v53  ;;  %v1833_v61 = vpop.eup %1289 }
  0xfc   : > { %v1292_v62 = vpop.eup %1291  ;;  %v764_v5 = vrot.slane %v1833_v61, 7  ;;  %v800_v53 = vrot.slane %v1833_v61, 1 }
  0xfd   : > { %v662_v55 = vpop.f32.mrf.mxu0  ;;  %v620_v56 = vpop.f32.mrf.mxu2 }
  0xfe   : > { %v642_v57 = vpop.f32.mrf.mxu3  ;;  %v744_v58 = vmul.f32 %v1286_v51, %v662_v55  ;;  %v684_v59 = vpop.f32.mrf.mxu1  ;;  %v896_v51 = vld [vmem:[#allocation10 + $0x150] sm:$0xff]  ;;  %v878_v56 = vld [vmem:[#allocation10 + $0xc0] sm:$0xff] }
  0xff   : > { %v745_v60 = vmul.f32 %v1288_v54, %v684_v59  ;;  %v1835_v63 = vpop.eup %1293  ;;  %951 = vmatpush.msra.mxu3 %v896_v51  ;;  %933 = vmatpush.msra.mxu2 %v878_v56 }
 0x100   : > { %1301 = vtanh.f32 %v744_v58  ;;  %v1296_v0 = vpop.eup %1295  ;;  %v767_v9 = vrot.slane %v1835_v63, 6  ;;  %v787_v31 = vrot.slane %v1835_v63, 7  ;;  %v861_v58 = vld [vmem:[#allocation10 + $0x38] sm:$0xff] }
 0x101   : > { %1303 = vtanh.f32 %v745_v60  ;;  %v1837_v4 = vpop.eup %1297  ;;  %914 = vmatpush.msra.mxu1 %v861_v58 }
 0x102   : > { %v1840_v8 = vpop.eup %1299  ;;  %v766_v21 = vsel %vm765_vm5, %v764_v5, %v1837_v4  ;;  %v785_v29 = vrot.slane %v1837_v4, 1  ;;  %v799_v52 = vrot.slane %v1837_v4, 2  ;;  %v876_v5 = vld [vmem:[#allocation10 + $0xb0] sm:$0xff] }
 0x103   : > { %v770_v20 = vrot.slane %v1840_v8, 5  ;;  %v769_v26 = vsel %vm768_vm6, %v767_v9, %v766_v21  ;;  %v789_v44 = vrot.slane %v1840_v8, 6  ;;  %915 = vmatpush.msra.mxu1 %v860_v2 }
 0x104   : > { %v786_v43 = vsel %vm765_vm5, %v1833_v61, %v785_v29  ;;  %v801_v4 = vsel %vm765_vm5, %v800_v53, %v799_v52  ;;  %v873_v29 = vld [vmem:[#allocation10 + $0x98] sm:$0xff] }
 0x105   : > { %v664_v6 = vpop.f32.mrf.mxu0  ;;  %v706_v3 = vpop.f32.mrf.mxu2  ;;  %v772_v34 = vsel %vm771_vm7, %v770_v20, %v769_v26  ;;  %v788_v48 = vsel %vm768_vm6, %v787_v31, %v786_v43  ;;  %v802_v11 = vsel %vm768_vm6, %v1835_v63, %v801_v4  ;;  %v856_v63 = vld [vmem:[#allocation10 + $0x10] sm:$0xff]  ;;  %v854_v26 = vld [vmem:[#allocation10] sm:$0xff] }
 0x106   : > { %v728_v10 = vpop.f32.mrf.mxu3  ;;  %v1843_v13 = vpop.eup %1301  ;;  %v746_v14 = vmul.f32 %v1296_v0, %v706_v3  ;;  %v790_v60 = vsel %vm771_vm7, %v789_v44, %v788_v48  ;;  %v877_v0 = vld [vmem:[#allocation10 + $0xb8] sm:$0xff]  ;;  %v859_v6 = vld [vmem:[#allocation10 + $0x28] sm:$0xff]  ;;  %v803_v3 = vrot.slane %v1840_v8, 7  ;;  %v872_v31 = vld [vmem:[#allocation10 + $0x90] sm:$0xff] }
 0x107   : > { %v747_v15 = vmul.f32 %v1292_v62, %v728_v10  ;;  %v686_v16 = vpop.f32.mrf.mxu1  ;;  %v1848_v24 = vpop.eup %1303  ;;  %v773_v25 = vrot.slane %v1843_v13, 4  ;;  %v791_v49 = vrot.slane %v1843_v13, 5  ;;  %934 = vmatpush.msra.mxu2 %v877_v0  ;;  %v805_v12 = vrot.slane %v1843_v13, 6  ;;  %916 = vmatpush.msra.mxu1 %v859_v6  ;;  %v1276_v48 = vld [vmem:[%s1938_s6] ss:$0 sm:$0xff] }
 0x108   : > { %1305 = vtanh.f32 %v746_v14  ;;  %v776_v35 = vrot.slane %v1848_v24, 3  ;;  %v793_v62 = vrot.slane %v1848_v24, 4  ;;  %v858_v14 = vld [vmem:[#allocation10 + $0x20] sm:$0xff]  ;;  %v804_v17 = vsel %vm771_vm7, %v803_v3, %v802_v11 }
 0x109   : > { %1307 = vtanh.f32 %v747_v15  ;;  %v775_v39 = vsel %vm774_vm8, %v773_v25, %v772_v34  ;;  %v792_v61 = vsel %vm774_vm8, %v791_v49, %v790_v60  ;;  %935 = vmatpush.msra.mxu2 %v876_v5  ;;  %v857_v15 = vld [vmem:[#allocation10 + $0x18] sm:$0xff]  ;;  %v807_v18 = vrot.slane %v1848_v24, 5  ;;  %917 = vmatpush.msra.mxu1 %v858_v14  ;;  %v875_v24 = vld [vmem:[#allocation10 + $0xa8] sm:$0xff] }
 0x10a   : > { %v778_v54 = vsel %vm777_vm9, %v776_v35, %v775_v39  ;;  %v794_v7 = vsel %vm777_vm9, %v793_v62, %v792_v61  ;;  %v806_v8 = vsel %vm774_vm8, %v805_v12, %v804_v17  ;;  %v895_v25 = vld [vmem:[#allocation10 + $0x148] sm:$0xff]  ;;  %v870_v35 = vld [vmem:[#allocation10 + $0x80] sm:$0xff] }
 0x10b   : > { %918 = vmatpush.msra.mxu1 %v857_v15  ;;  %v808_v13 = vsel %vm777_vm9, %v807_v18, %v806_v8  ;;  %936 = vmatpush.msra.mxu2 %v875_v24  ;;  %v891_v34 = vld [vmem:[#allocation10 + $0x128] sm:$0xff] }
 0x10c   : > { %952 = vmatpush.msra.mxu3 %v895_v25  ;;  %v887_v39 = vld [vmem:[#allocation10 + $0x108] sm:$0xff] }
 0x10d   : > { %v708_v37 = vpop.f32.mrf.mxu2  ;;  %919 = vmatpush.msra.mxu1 %v856_v63  ;;  %937 = vmatpush.msra.mxu2 %v874_v27 }
 0x10e   : > { %v730_v38 = vpop.f32.mrf.mxu3  ;;  %v1857_v42 = vpop.eup %1305  ;;  %953 = vmatpush.msra.mxu3 %v894_v28  ;;  %v889_v37 = vld [vmem:[#allocation10 + $0x118] sm:$0xff] }
 0x10f   : > { %v1308_v46 = vpop.eup %1307  ;;  %v779_v47 = vrot.slane %v1857_v42, 2  ;;  %v795_v1 = vrot.slane %v1857_v42, 3  ;;  %v809_v19 = vrot.slane %v1857_v42, 4  ;;  %920 = vmatpush.msra.mxu1 %v855_v23  ;;  %938 = vmatpush.msra.mxu2 %v873_v29  ;;  %v888_v38 = vld [vmem:[#allocation10 + $0x110] sm:$0xff] }
 0x110   : > { %v782_v55 = vrot.slane %v1308_v46, 1  ;;  %v797_v9 = vrot.slane %v1308_v46, 2  ;;  %v811_v20 = vrot.slane %v1308_v46, 3  ;;  %954 = vmatpush.msra.mxu3 %v893_v30 }
 0x111   : > { %v781_v57 = vsel %vm780_vm10, %v779_v47, %v778_v54  ;;  %v796_v10 = vsel %vm780_vm10, %v795_v1, %v794_v7  ;;  %v810_v21 = vsel %vm780_vm10, %v809_v19, %v808_v13  ;;  %921 = vmatpush.msra.mxu1 %v854_v26  ;;  %939 = vmatpush.msra.mxu2 %v872_v31 }
 0x112   : > { %v784_v59 = vsel %vm783_vm11, %v782_v55, %v781_v57  ;;  %v798_v16 = vsel %vm783_vm11, %v797_v9, %v796_v10  ;;  %v812_v22 = vsel %vm783_vm11, %v811_v20, %v810_v21  ;;  %955 = vmatpush.msra.mxu3 %v892_v32 }
 0x113   : > { %1176 = vmatmul.msk.f32.vlgmr.msra.gmra.mxu0 %vm821_vm12, %v784_v59  ;;  %940 = vmatpush.msra.mxu2 %v871_v33 }
 0x114   : > { %956 = vmatpush.msra.mxu3 %v891_v34 }
 0x115   : > { %941 = vmatpush.msra.mxu2 %v870_v35 }
 0x116   : > { %957 = vmatpush.msra.mxu3 %v890_v36 }
 0x118   : > { %958 = vmatpush.msra.mxu3 %v889_v37 }
 0x11a   : > { %959 = vmatpush.msra.mxu3 %v888_v38 }
 0x11b   : > { %1177 = vmatmul.msk.f32.gmra.mxu0 %vm821_vm12, %v798_v16 }
 0x11c   : > { %960 = vmatpush.msra.mxu3 %v887_v39 }
 0x11e   : > { %961 = vmatpush.msra.mxu3 %v886_v40 }
 0x123   : > { %1178 = vmatmul.msk.f32.gmra.mxu0 %vm821_vm12, %v812_v22 }
 0x190   : > { %v845_v42 = vpop.f32.mrf.mxu0 }
 0x191   : > { %v846_v43 = vadd.f32 %v1275_v41, %v845_v42 }
 0x193   : > { %922 = vmatmul.f32.vlgmr.msra.gmra.mxu1 %v846_v43 }
 0x198   : > { %v848_v44 = vpop.f32.mrf.mxu0 }
 0x199   : > { %v849_v45 = vadd.f32 %v1275_v41, %v848_v44 }
 0x19b   : > { %942 = vmatmul.f32.vlgmr.msra.gmra.mxu2 %v849_v45 }
 0x1a0   : > { %v851_v46 = vpop.f32.mrf.mxu0 }
 0x1a1   : > { %v852_v47 = vadd.f32 %v1275_v41, %v851_v46 }
 0x1a3   : > { %962 = vmatmul.f32.vlgmr.msra.gmra.mxu3 %v852_v47 }
 0x210   : > { %v923_v49 = vpop.f32.mrf.mxu1 }
 0x211   : > { %v924_v51 = vadd.f32 %v1276_v48, %v923_v49 }
 0x21e   : > { %v943_v50 = vpop.f32.mrf.mxu2 }
 0x21f   : > { %v944_v52 = vadd.f32 %v943_v50, %v924_v51 }
 0x226   : > { %v963_v53 = vpop.f32.mrf.mxu3 }
 0x227   : > { %v964_v54 = vadd.f32 %v963_v53, %v944_v52 }
 0x229   : > { %966 = vst [vmem:[%s407_s24] sm:$0xff] %v964_v54 }
 0x22a   : > { %1486 = shalt.err (!%p1483_p6)
}
 0x22b   : > { %1207 = dma.vmem_to_hbm [thread:$0]  (%p1651_p0), %s981_s21, 128, %s983_s12, %s968_s8  }
 0x22c PF: > { %s1975_s1 = sld [smem:[#allocation16_spill]]  ;;  %p1977_p10 = scmp.ge.s32.totalorder %s1533_s27, 2 }
 0x22e   : > { %p1227_p11 = pnand %p1977_p10, %p1659_p5 }
 0x230   : > { %p1228_p12 = pneg %p1227_p11 }
 0x232   : > { %s994_s29 = sand.u32 1, %s1975_s1  }
 0x233   : > { %s995_s17 = scalar_lea.sflag [#allocation4], %s994_s29 }
 0x234   : > { %1516 = dma.done.wait (%p1228_p12), %s995_s17, 128  }
 0x235   : > { %1518 = vsyncadd (%p1228_p12), %s995_s17, 4294967168  ;;  %s1978_s27 = sld [smem:[#allocation18_spill]]  ;;  %s1981_s24 = smov %s1525_s25 }
 0x236   : > { %s1979_s20 = sld [smem:[#allocation17_spill]] }
 0x237   : > { %s1980_s26 = sld [smem:[#allocation19_spill]] }
 0x23b   : > { %p24_p3 = scmp.ge.s32.totalorder %s1978_s27, 4  }
 0x23c   : > { %s1982_s25 = smov %s1979_s20 }
 0x23d   :  { %26 = sbr.rel (!%p24_p3) target bundleno = 12 (0xc), region = 125 }
 0x242   :  { %1001 = vsyncpa [#allocation3], 1 }
 0x243   :  { %1003 = vsyncpa [#allocation3 + $0x1], 1 }
 0x244   :  { %1004 = vsyncpa [#allocation6], 1 }
 0x245   :  { %1006 = vsyncpa [#allocation6 + $0x1], 1 }
 0x246   :  { %1007 = vsyncpa [#allocation9], 1 }
 0x247   :  { %1008 = vsyncpa [#allocation4], 1 }
 0x248   :  { %1010 = vsyncpa [#allocation4 + $0x1], 1 }

</bundles_post_ra>
